<compile_context>
chip_gen: v6e
topology: v6e:2x2x1
jax: 0.10.0
libtpu: 0.0.40
codegen_flags: <defaults>
</compile_context>

<pallas_src>
import jax
import jax.numpy as jnp
from jax.experimental import pallas as pl
from jax.experimental.pallas import tpu as pltpu

N_CLASSES = 10
HIDDEN = 128
LANE = 128
SUBLANE = 16            # bf16 sublane pack; batch alignment
DEFAULT_TILE_B = 512
VMEM_BUDGET = 48 * 1024 * 1024   # stay well under v7x's 64 MiB physical VMEM


def _round_up(x, m):
    return (x + m - 1) // m * m


def expert_kernel(x_ref, w1_ref, b1_ref, w2_ref, b2_ref, o_ref):
    # x arrives as f32 straight from HBM; cast to bf16 in-register for the MXU
    # (VPU work, hidden under DMA/MXU).
    x = x_ref[...].astype(jnp.bfloat16)
    # fc1: [tile_b, in_dim](bf16) @ [in_dim, 128](bf16) -> f32 accumulate on the MXU.
    h = jnp.dot(x, w1_ref[...], preferred_element_type=jnp.float32)
    # bias + ReLU in f32 (v5e has no bf16 VPU path).
    h = jnp.maximum(h + b1_ref[...], 0.0)
    # dropout: eval-mode identity (see TODO at top).
    # fc2: [tile_b, 128](bf16) @ [128, N](bf16) -> f32 accumulate.
    out = jnp.dot(h.astype(jnp.bfloat16), w2_ref[...],
                  preferred_element_type=jnp.float32)
    # bf16 lane-dense store (N is a multiple of 128 -> unmasked vst; halves the output stream).
    o_ref[...] = (out + b2_ref[...]).astype(o_ref.dtype)


def pad_expert_params(w1, b1, w2, b2):
    """One-time weight/bias padding + cast (hoisted out of the per-call path).

    w1: [in_dim, hidden], b1: [1, hidden], w2: [hidden, n_cls], b2: [1, n_cls].
    Only output-feature dims are padded to the 128-lane width; padded lanes are zero so
    they contribute 0 and are sliced off by the wrapper.  The fc1 contraction dim (in_dim)
    is left unpadded so x can be streamed from HBM as-is.
    """
    in_dim, hidden = w1.shape
    _, n_cls = w2.shape
    H = _round_up(hidden, LANE)
    N = _round_up(n_cls, LANE)
    w1_p = jnp.zeros((in_dim, H), jnp.bfloat16).at[:, :hidden].set(w1.astype(jnp.bfloat16))
    b1_p = jnp.zeros((1, H), jnp.float32).at[:, :hidden].set(b1.astype(jnp.float32))
    w2_p = jnp.zeros((H, N), jnp.bfloat16).at[:hidden, :n_cls].set(w2.astype(jnp.bfloat16))
    b2_p = jnp.zeros((1, N), jnp.float32).at[:hidden, :n_cls].set(b2.astype(jnp.float32))
    return (w1_p, b1_p, w2_p, b2_p), n_cls


def expert_forward(x, padded_params, n_cls, tile_b=DEFAULT_TILE_B):
    """x: [B, in_dim] f32.  padded_params from pad_expert_params.  Returns [B, n_cls] f32."""
    w1_p, b1_p, w2_p, b2_p = padded_params
    B, in_dim = x.shape
    H = w1_p.shape[1]
    N = w2_p.shape[1]

    # Pad batch only up to the 16-row pack (cheap; no pad op at all if already aligned).
    B16 = _round_up(B, SUBLANE)

    # Tile selection:
    #  * never larger than the (16-aligned) batch,
    #  * >=2 tiles whenever possible so the "parallel" axis spans both v7x TensorCores,
    #  * shrink if the double-buffered VMEM footprint would blow the budget.
    tile_b = min(tile_b, B16)
    if B16 >= 2 * SUBLANE:
        tile_b = min(tile_b, _round_up(pl.cdiv(B16, 2), SUBLANE))
    tile_b = max(SUBLANE, _round_up(tile_b, SUBLANE))

    def vmem_bytes(tb):
        x_blk = 2 * tb * in_dim * 4                      # f32 x block, double-buffered
        o_blk = 2 * tb * N * 2                           # bf16 out block, double-buffered
        w_res = 2 * (in_dim * H * 2 + H * N * 2 + H * 4 + N * 4)  # resident weights/biases
        return x_blk + o_blk + w_res

    while tile_b > SUBLANE and vmem_bytes(tile_b) > VMEM_BUDGET:
        tile_b = max(SUBLANE, _round_up(tile_b // 2, SUBLANE))
    vmem_limit = min(56 * 1024 * 1024,
                     max(16 * 1024 * 1024, int(vmem_bytes(tile_b) * 1.25)))

    x_in = x if B16 == B else jnp.zeros((B16, in_dim), x.dtype).at[:B].set(x)

    grid = (pl.cdiv(B16, tile_b),)  # partial last block is fine: rows are independent
    out = pl.pallas_call(
        expert_kernel,
        out_shape=jax.ShapeDtypeStruct((B16, N), jnp.bfloat16),
        grid_spec=pl.GridSpec(
            grid=grid,
            in_specs=[
                pl.BlockSpec((tile_b, in_dim), lambda i: (i, 0)),  # x: streams over batch
                pl.BlockSpec((in_dim, H), lambda i: (0, 0)),       # w1: VMEM-resident
                pl.BlockSpec((1, H), lambda i: (0, 0)),            # b1: VMEM-resident
                pl.BlockSpec((H, N), lambda i: (0, 0)),            # w2: VMEM-resident
                pl.BlockSpec((1, N), lambda i: (0, 0)),            # b2: VMEM-resident
            ],
            out_specs=pl.BlockSpec((tile_b, N), lambda i: (i, 0)),
        ),
        compiler_params=pltpu.CompilerParams(
            dimension_semantics=("parallel",),   # batch tiles independent (2 TCs on v7x)
            vmem_limit_bytes=vmem_limit,
        ),
    )(x_in, w1_p, b1_p, w2_p, b2_p)

    # Strip batch/class padding and upcast to f32 in the wrapper.
    return out[:B, :n_cls].astype(jnp.float32)


def init_expert_params(key, in_dim, n_classes=N_CLASSES):
    """Deterministic init matching nn.Linear shapes (weights stored transposed: [in, out])."""
    k1, k2, k3, k4 = jax.random.split(key, 4)
    bound1 = 1.0 / jnp.sqrt(in_dim)
    bound2 = 1.0 / jnp.sqrt(HIDDEN)
    w1 = jax.random.uniform(k1, (in_dim, HIDDEN), jnp.float32, -bound1, bound1)
    b1 = jax.random.uniform(k2, (1, HIDDEN), jnp.float32, -bound1, bound1)
    w2 = jax.random.uniform(k3, (HIDDEN, n_classes), jnp.float32, -bound2, bound2)
    b2 = jax.random.uniform(k4, (1, n_classes), jnp.float32, -bound2, bound2)
    return w1, b1, w2, b2


def _reference_f32(x, w1, b1, w2, b2):
    return jnp.maximum(x @ w1 + b1, 0.0) @ w2 + b2


def _reference_matched(x, w1, b1, w2, b2):
    # Same precision choices as the kernel: bf16 operands, f32 accumulate, bf16 final store.
    h = jnp.maximum(
        jnp.dot(x.astype(jnp.bfloat16), w1.astype(jnp.bfloat16),
                preferred_element_type=jnp.float32) + b1, 0.0)
    o = jnp.dot(h.astype(jnp.bfloat16), w2.astype(jnp.bfloat16),
                preferred_element_type=jnp.float32) + b2
    return o.astype(jnp.bfloat16).astype(jnp.float32)


if __name__ == "__main__":
    key = jax.random.PRNGKey(0)
    k_x1, k_x2, k_p = jax.random.split(key, 3)

    in_dim = 32
    w1, b1, w2, b2 = init_expert_params(k_p, in_dim, N_CLASSES)
    padded_params, n_cls = pad_expert_params(w1, b1, w2, b2)

    # Case 1: small batch (pads 8 -> 16, single grid step).
    x1 = jax.random.normal(k_x1, (8, in_dim), jnp.float32)
    out1 = jax.block_until_ready(expert_forward(x1, padded_params, n_cls))
    assert out1.shape == (8, N_CLASSES)

    # Case 2: non-aligned batch (40 -> 48 padded, 2 grid steps, partial last block).
    x2 = jax.random.normal(k_x2, (40, in_dim), jnp.float32)
    out2 = jax.block_until_ready(expert_forward(x2, padded_params, n_cls))
    assert out2.shape == (40, N_CLASSES)

    for x, out in ((x1, out1), (x2, out2)):
        ref_f32 = _reference_f32(x, w1, b1, w2, b2)
        assert jnp.allclose(out, ref_f32, atol=5e-2, rtol=5e-2), (
            float(jnp.max(jnp.abs(out - ref_f32))))
        ref_m = _reference_matched(x, w1, b1, w2, b2)
        assert jnp.allclose(out, ref_m, atol=1.5e-2, rtol=1.5e-2), (
            float(jnp.max(jnp.abs(out - ref_m))))

    print("KERNEL_OK")
</pallas_src>

<mosaic_0001>
module attributes {stable_mosaic.version = 11 : i64} {
  func.func @expert_kernel(%arg0: i32, %arg1: memref<16x32xf32, #tpu.memory_space<vmem>>, %arg2: memref<32x128xbf16, #tpu.memory_space<vmem>>, %arg3: memref<1x128xf32, #tpu.memory_space<vmem>>, %arg4: memref<128x128xbf16, #tpu.memory_space<vmem>>, %arg5: memref<1x128xf32, #tpu.memory_space<vmem>>, %arg6: memref<16x128xbf16, #tpu.memory_space<vmem>>) attributes {dimension_semantics = [#tpu.dimension_semantics<parallel>], iteration_bounds = array<i64: 1>, scalar_prefetch = 0 : i64, scratch_operands = 0 : i64, tpu.core_type = #tpu.core_type<tc>, window_params = [{transform_indices = @transform_0, window_bounds = array<i64: 16, 32>}, {pipeline_mode = #tpu.pipeline_mode<synchronous>, transform_indices = @transform_1, window_bounds = array<i64: 32, 128>}, {pipeline_mode = #tpu.pipeline_mode<synchronous>, transform_indices = @transform_2, window_bounds = array<i64: 1, 128>}, {pipeline_mode = #tpu.pipeline_mode<synchronous>, transform_indices = @transform_3, window_bounds = array<i64: 128, 128>}, {pipeline_mode = #tpu.pipeline_mode<synchronous>, transform_indices = @transform_4, window_bounds = array<i64: 1, 128>}, {transform_indices = @transform_5, window_bounds = array<i64: 16, 128>}]} {
    %c0 = arith.constant 0 : index
    %c0_0 = arith.constant 0 : index
    %0 = vector.load %arg1[%c0, %c0_0] : memref<16x32xf32, #tpu.memory_space<vmem>>, vector<16x32xf32>
    %1 = arith.truncf %0 : vector<16x32xf32> to vector<16x32xbf16>
    %c0_1 = arith.constant 0 : index
    %c0_2 = arith.constant 0 : index
    %2 = vector.load %arg2[%c0_1, %c0_2] : memref<32x128xbf16, #tpu.memory_space<vmem>>, vector<32x128xbf16>
    %cst = arith.constant dense<0.000000e+00> : vector<16x128xf32>
    %3 = tpu.matmul %1, %2, %cst {dimension_numbers = #tpu.dot_dimension_numbers<[1], [0], [0], [1], [0, 0, 1, 1], [], []>} : vector<16x32xbf16>, vector<32x128xbf16>, vector<16x128xf32> -> vector<16x128xf32>
    %c0_3 = arith.constant 0 : index
    %c0_4 = arith.constant 0 : index
    %4 = vector.load %arg3[%c0_3, %c0_4] : memref<1x128xf32, #tpu.memory_space<vmem>>, vector<1x128xf32>
    %5 = vector.broadcast %4 : vector<1x128xf32> to vector<16x128xf32>
    %6 = arith.addf %3, %5 : vector<16x128xf32>
    %cst_5 = arith.constant 0.000000e+00 : f32
    %7 = vector.broadcast %cst_5 : f32 to vector<16x128xf32>
    %8 = arith.maximumf %6, %7 : vector<16x128xf32>
    %9 = arith.truncf %8 : vector<16x128xf32> to vector<16x128xbf16>
    %c0_6 = arith.constant 0 : index
    %c0_7 = arith.constant 0 : index
    %10 = vector.load %arg4[%c0_6, %c0_7] : memref<128x128xbf16, #tpu.memory_space<vmem>>, vector<128x128xbf16>
    %cst_8 = arith.constant dense<0.000000e+00> : vector<16x128xf32>
    %11 = tpu.matmul %9, %10, %cst_8 {dimension_numbers = #tpu.dot_dimension_numbers<[1], [0], [0], [1], [0, 0, 1, 1], [], []>} : vector<16x128xbf16>, vector<128x128xbf16>, vector<16x128xf32> -> vector<16x128xf32>
    %c0_9 = arith.constant 0 : index
    %c0_10 = arith.constant 0 : index
    %12 = vector.load %arg5[%c0_9, %c0_10] : memref<1x128xf32, #tpu.memory_space<vmem>>, vector<1x128xf32>
    %13 = vector.broadcast %12 : vector<1x128xf32> to vector<16x128xf32>
    %14 = arith.addf %11, %13 : vector<16x128xf32>
    %15 = arith.truncf %14 : vector<16x128xf32> to vector<16x128xbf16>
    %c0_11 = arith.constant 0 : index
    %c0_12 = arith.constant 0 : index
    %16 = vector.load %arg6[%c0_11, %c0_12] : memref<16x128xbf16, #tpu.memory_space<vmem>>, vector<16x128xbf16>
    tpu.vector_store %arg6[%c0_11, %c0_12], %15 {strides = array<i32>} : memref<16x128xbf16, #tpu.memory_space<vmem>>, vector<16x128xbf16>,
    return
  }
  func.func @transform_0(%arg0: i32) -> (i32, i32) {
    %c0_i32 = arith.constant 0 : i32
    %c0_i32_0 = arith.constant 0 : i32
    return %arg0, %c0_i32 : i32, i32
  }
  func.func @transform_1(%arg0: i32) -> (i32, i32) {
    %c0_i32 = arith.constant 0 : i32
    %c0_i32_0 = arith.constant 0 : i32
    %c0_i32_1 = arith.constant 0 : i32
    return %c0_i32, %c0_i32_0 : i32, i32
  }
  func.func @transform_2(%arg0: i32) -> (i32, i32) {
    %c0_i32 = arith.constant 0 : i32
    %c0_i32_0 = arith.constant 0 : i32
    %c0_i32_1 = arith.constant 0 : i32
    return %c0_i32, %c0_i32_0 : i32, i32
  }
  func.func @transform_3(%arg0: i32) -> (i32, i32) {
    %c0_i32 = arith.constant 0 : i32
    %c0_i32_0 = arith.constant 0 : i32
    %c0_i32_1 = arith.constant 0 : i32
    return %c0_i32, %c0_i32_0 : i32, i32
  }
  func.func @transform_4(%arg0: i32) -> (i32, i32) {
    %c0_i32 = arith.constant 0 : i32
    %c0_i32_0 = arith.constant 0 : i32
    %c0_i32_1 = arith.constant 0 : i32
    return %c0_i32, %c0_i32_0 : i32, i32
  }
  func.func @transform_5(%arg0: i32) -> (i32, i32) {
    %c0_i32 = arith.constant 0 : i32
    %c0_i32_0 = arith.constant 0 : i32
    return %arg0, %c0_i32 : i32, i32
  }
}

</mosaic_0001>

<bundles_post_ra>
// kernel: tpu_custom_call.1
= control target key start
LH: loop header
LB: loop body
LE: loop exit
PB: predicated region body
PF: predicated region fallthrough
CT: control target
= control target key end

     0   :  { %10 = vsyncpa [#allocation3], 0  ;;  %s512_s0 = inlined_call_operand.hbm [shape: f32[16,32], index: 0, kind: input, shape index: {}]   ;;  %s513_s1 = inlined_call_operand.hbm [shape: bf16[32,128], index: 1, kind: input, shape index: {}]   ;;  %s514_s2 = inlined_call_operand.vmem [shape: f32[1,128], index: 2, kind: input, shape index: {}]   ;;  %s515_s3 = inlined_call_operand.hbm [shape: bf16[128,128], index: 3, kind: input, shape index: {}]   ;;  %s516_s4 = inlined_call_operand.vmem [shape: f32[1,128], index: 4, kind: input, shape index: {}]   ;;  %s517_s5 = inlined_call_operand.hbm [shape: bf16[16,128], index: 5, kind: output, shape index: {}]  }
   0x1   :  { %11 = vsyncpa [#allocation6], 0 }
   0x2   :  { %12 = vsyncpa [#allocation4], 0  ;;  %s445_s18 = smov [#allocation5]  }
   0x3   :  { %s30_s19 = sshll.u32 %s445_s18, 4  ;;  %s31_s19 = int_to_ptr.vmem [resolvable:$true] %s30_s19 }
   0x4   :  { %s367_s20 = scalar_lea.vmem %s31_s19, 256  ;;  %p372_p1 = scmp.lt.s32.totalorder %s31_s19, %s31_s19 }
   0x5   :  { %p368_p0 = scmp.ne.s32.totalorder %s31_s19, %s367_s20  ;;  %p373_p2 = scmp.lt.s32.totalorder %s367_s20, %s367_s20 }
   0x7   :  { %p374_p3 = por %p373_p2, %p372_p1 }
   0x9   :  { %p375_p4 = pnand %p374_p3, %p368_p0 }
   0xb   :  { %378 = shalt.err (!%p375_p4)
}
   0xc   :  { %s446_s21 = smov 64   ;;  %s447_s22 = smov 4  }
   0xd   :  { %36 = dma.hbm_to_vmem [thread:$0]  %s513_s1, 256, %s31_s19, [#allocation6], %s446_s21, %s446_s21, %s447_s22  }
   0xe   :  { %s448_s25 = smov [#allocation2]  }
   0xf   :  { %s18_s26 = sshll.u32 %s448_s25, 4  ;;  %s19_s26 = int_to_ptr.vmem [resolvable:$true] %s18_s26 }
  0x10   :  { %s387_s27 = scalar_lea.vmem %s19_s26, 256  ;;  %p392_p6 = scmp.lt.s32.totalorder %s19_s26, %s19_s26 }
  0x11   :  { %p388_p5 = scmp.ne.s32.totalorder %s19_s26, %s387_s27  ;;  %p393_p7 = scmp.lt.s32.totalorder %s387_s27, %s387_s27 }
  0x13   :  { %p394_p8 = por %p393_p7, %p392_p6 }
  0x15   :  { %p395_p9 = pnand %p394_p8, %p388_p5 }
  0x17   :  { %398 = shalt.err (!%p395_p9)
}
  0x18   :  { %s449_s28 = smov 128   ;;  %s450_s29 = smov 8  }
  0x19   :  { %24 = dma.hbm_to_vmem [thread:$0]  %s512_s0, 256, %s19_s26, [#allocation3], %s449_s28, %s449_s28, %s450_s29  }
  0x1a   :  { %s451_s7 = smov [#allocation7]  }
  0x1b   :  { %s44_s8 = sshll.u32 %s451_s7, 4  ;;  %s45_s8 = int_to_ptr.vmem [resolvable:$true] %s44_s8 }
  0x1c   :  { %s407_s1 = scalar_lea.vmem %s45_s8, 1024  ;;  %p412_p11 = scmp.lt.s32.totalorder %s45_s8, %s45_s8 }
  0x1d   :  { %p408_p10 = scmp.ne.s32.totalorder %s45_s8, %s407_s1  ;;  %p413_p12 = scmp.lt.s32.totalorder %s407_s1, %s407_s1 }
  0x1f   :  { %p414_p13 = por %p413_p12, %p412_p11 }
  0x21   :  { %p415_p0 = pnand %p414_p13, %p408_p10 }
  0x23   :  { %418 = shalt.err (!%p415_p0)
}
  0x24   :  { %50 = dma.hbm_to_vmem [thread:$0]  %s515_s3, 1024, %s45_s8, [#allocation6], %s446_s21, %s446_s21, %s447_s22  }
  0x25   :  { %439 = dma.done.wait [#allocation3], 256  }
  0x26   :  { %440 = vsyncadd [#allocation3], 4294967040 }
  0x27   :  { %441 = dma.done.wait [#allocation6], 1280  }
  0x28   :  { %442 = vsyncadd [#allocation6], 4294966016  ;;  %v452_v0 = vmov 0.0   ;;  %vm453_vm0 = vmmov 0   ;;  %v349_v1 = vld [vmem:[#allocation5 + $0x8] sm:$0xff]   ;;  %v350_v2 = vld [vmem:[#allocation5] sm:$0xff]  }
  0x29   :  { %311 = vmatprep.subr.bf16.mxu0 %v452_v0  ;;  %315 = vmatprep.mubr.msk.bf16.mxu0 %vm453_vm0, %v452_v0  ;;  %v63_v3 = vld [vmem:[#allocation2] sm:$0xff]  ;;  %v64_v4 = vld [vmem:[#allocation2 + $0x8] sm:$0xff]  ;;  %v351_v5 = vld [vmem:[#allocation7 + $0x38] sm:$0xff]   ;;  %vm89_vm1 = vcmask 261120   ;;  %s454_s13 = smov [#allocation8]  }
  0x2a   :  { %319 = vmatprep.subr.bf16.mxu1 %v452_v0  ;;  %335 = vmatprep.mubr.msk.bf16.mxu1 %vm453_vm0, %v452_v0  ;;  %v65_v6 = vpack.c.bf16 %v64_v4, %v63_v3  ;;  %v352_v7 = vld [vmem:[#allocation7 + $0x30] sm:$0xff]   ;;  %v353_v8 = vld [vmem:[#allocation7 + $0x28] sm:$0xff]   ;;  %v354_v9 = vld [vmem:[#allocation7 + $0x20] sm:$0xff]   ;;  %s264_s14 = sshll.u32 %s454_s13, 4  ;;  %s265_s14 = int_to_ptr.vmem [resolvable:$true] %s264_s14 }
  0x2b   :  { %312 = vmatpush3.bf16.msra.mxu0 %v349_v1  ;;  %320 = vmatpush3.bf16.msra.mxu1 %v351_v5  ;;  %v355_v10 = vld [vmem:[#allocation7 + $0x18] sm:$0xff]   ;;  %v356_v11 = vld [vmem:[#allocation7 + $0x10] sm:$0xff]   ;;  %v357_v12 = vld [vmem:[#allocation7 + $0x8] sm:$0xff]   ;;  %p424_p2 = scmp.lt.s32.totalorder %s265_s14, %s265_s14 }
  0x2c   :  { %313 = vmatprep.subr.bf16.mxu0 %v452_v0  ;;  %321 = vmatprep.subr.bf16.mxu1 %v452_v0  ;;  %v358_v13 = vld [vmem:[#allocation7] sm:$0xff]  }
  0x2d   :  { %v277_v14 = vld [vmem:[%s514_s2] ss:$0 sm:$0xff]  ;;  %s419_s2 = scalar_lea.vmem %s265_s14, 128 }
  0x2e   :  { %v281_v25 = vld [vmem:[%s516_s4] ss:$0 sm:$0xff]  ;;  %p420_p1 = scmp.ne.s32.totalorder %s265_s14, %s419_s2  ;;  %p425_p3 = scmp.lt.s32.totalorder %s419_s2, %s419_s2 }
  0x2f   :  { %314 = vmatpush3.bf16.msra.mxu0 %v350_v2  ;;  %322 = vmatpush3.bf16.msra.mxu1 %v352_v7 }
  0x30   :  { %323 = vmatprep.subr.bf16.mxu1 %v452_v0  ;;  %p426_p4 = por %p425_p3, %p424_p2 }
  0x32   :  { %316 = vmatmul.mubr.msk.bf16.vlgmr.msra.gmra.mxu0 %vm89_vm1, %v65_v6  ;;  %p427_p5 = pnand %p426_p4, %p420_p1 }
  0x33   :  { %324 = vmatpush3.bf16.msra.mxu1 %v353_v8 }
  0x34   :  { %325 = vmatprep.subr.bf16.mxu1 %v452_v0 }
  0x37   :  { %326 = vmatpush3.bf16.msra.mxu1 %v354_v9 }
  0x38   :  { %327 = vmatprep.subr.bf16.mxu1 %v452_v0 }
  0x3b   :  { %328 = vmatpush3.bf16.msra.mxu1 %v355_v10 }
  0x3c   :  { %329 = vmatprep.subr.bf16.mxu1 %v452_v0 }
  0x3f   :  { %330 = vmatpush3.bf16.msra.mxu1 %v356_v11 }
  0x40   :  { %331 = vmatprep.subr.bf16.mxu1 %v452_v0 }
  0x43   :  { %332 = vmatpush3.bf16.msra.mxu1 %v357_v12 }
  0x44   :  { %333 = vmatprep.subr.bf16.mxu1 %v452_v0 }
  0x47   :  { %334 = vmatpush3.bf16.msra.mxu1 %v358_v13 }
  0xf2   :  { %v127_v15 = vpop.f32.mrf.mxu0 }
  0xf3   :  { %v128_v17 = vadd.f32 %v277_v14, %v127_v15 }
  0xf4   :  { %v317_v16 = vpop.f32.mrf.mxu0 }
  0xf5   :  { %v134_v21 = vmax.f32 %v128_v17, 0.0 }
  0xf6   :  { %v130_v18 = vpop.f32.mrf.mxu0 }
  0xf7   :  { %v131_v19 = vadd.f32 %v277_v14, %v130_v18 }
  0xf8   :  { %v318_v20 = vpop.f32.mrf.mxu0 }
  0xf9   :  { %v135_v22 = vmax.f32 %v131_v19, 0.0 }
  0xfb   :  { %v136_v23 = vpack.c.bf16 %v135_v22, %v134_v21 }
  0xfd   :  { %336 = vmatmul.mubr.bf16.vlgmr.msra.gmra.mxu1 %v136_v23 }
 0x1bd   :  { %v242_v24 = vpop.f32.mrf.mxu1 }
 0x1be   :  { %v243_v28 = vadd.f32 %v281_v25, %v242_v24 }
 0x1bf   :  { %v337_v26 = vpop.f32.mrf.mxu1 }
 0x1c1   :  { %v245_v27 = vpop.f32.mrf.mxu1 }
 0x1c2   :  { %v246_v29 = vadd.f32 %v281_v25, %v245_v27 }
 0x1c3   :  { %v338_v30 = vpop.f32.mrf.mxu1 }
 0x1c4   :  { %v297_v31 = vpack.c.bf16 %v246_v29, %v243_v28 }
 0x1c6   :  { %298 = vst [vmem:[#allocation8] sm:$0xff] %v297_v31  }
 0x1c7   :  { %430 = shalt.err (!%p427_p5)
}
 0x1c8   :  { %270 = dma.vmem_to_hbm [thread:$0]  %s265_s14, 128, %s517_s5, [#allocation4], %s446_s21, %s446_s21, %s447_s22  }
 0x1c9   :  { %443 = dma.done.wait [#allocation4], 128  }
 0x1ca   :  { %444 = vsyncadd [#allocation4], 4294967168 }
 0x1cb   :  { %274 = vsyncpa [#allocation3], 1 }
 0x1cc   :  { %275 = vsyncpa [#allocation6], 1 }
 0x1cd   :  { %276 = vsyncpa [#allocation4], 1 }

</bundles_post_ra>
